<compile_context>
chip_gen: v7x
topology: tpu7x:2x2x1
jax: 0.10.0
libtpu: 0.0.40
codegen_flags: <defaults>
</compile_context>

<pallas_src>
import functools
import math

import jax
import jax.numpy as jnp
import numpy as np
from jax.experimental import pallas as pl
from jax.experimental.pallas import tpu as pltpu

_VMEM_LIMIT_BYTES = 32 * 1024 * 1024   # safe scoped-VMEM budget on v5e/v6e/v7x
_LOG2E = math.log2(math.e)


def _attn_tiles(n: int):
    """Return (padded_n, tq, tk).

    N <= 128: single full-extent tile (legal for any N). Otherwise pad N to a
    multiple of 128 so the flash tiling never degenerates into a full (N, N)
    score tile; tk=256 targets the 256-wide MXU on v6e/v7x (sweep 128 on v5e).
    """
    if n <= 128:
        return n, n, n
    n_pad = ((n + 127) // 128) * 128
    tk = 256 if n_pad % 256 == 0 else 128
    return n_pad, 128, tk


def _head_pack(num_heads: int, head_dim: int, embed_dim: int) -> int:
    """Heads per kernel-2 grid step so the q/k/v lane block (pack*hd) is a
    multiple of 128 (lane-dense) or spans the full embedding dim."""
    if embed_dim <= 128 or embed_dim % 128 != 0:
        return num_heads
    for p in range(1, num_heads + 1):
        if num_heads % p == 0 and (p * head_dim) % 128 == 0:
            return p
    return num_heads


# ---------------------------------------------------------------------------
# Kernel 1: fused QKV projection -> q/k/v as lane-dense (B, Npad, D) bf16.
# ---------------------------------------------------------------------------
def _qkv_proj_kernel(x_ref, w_ref, b_ref, q_ref, k_ref, v_ref, *, d):
    # One fused (tqp, D) @ (D, 3D) matmul (f32 accumulation), bias add, then
    # three lane-dense (tqp, D) bf16 stores.
    y = jnp.dot(x_ref[0], w_ref[...], preferred_element_type=jnp.float32)
    y = y + b_ref[...]
    q_ref[0] = y[:, :d].astype(q_ref.dtype)
    k_ref[0] = y[:, d:2 * d].astype(k_ref.dtype)
    v_ref[0] = y[:, 2 * d:].astype(v_ref.dtype)


# ---------------------------------------------------------------------------
# Kernel 2: flash attention (base-2 online softmax, head groups) fused with
# the output projection, accumulated directly into the output block.
# ---------------------------------------------------------------------------
def _flash_attn_proj_kernel(q_ref, k_ref, v_ref, wp_ref, bp_ref, o_ref,
                            m_sc, l_sc, acc_sc, *,
                            pack, head_dim, n_valid, need_mask, approx_recip):
    g = pl.program_id(2)
    ki = pl.program_id(3)
    nk = pl.num_programs(3)
    tq = q_ref.shape[1]
    tk = k_ref.shape[1]

    @pl.when((g == 0) & (ki == 0))
    def _():
        # o_ref's block index is constant across (g, ki): it stays VMEM-resident
        # for the whole reduction, so accumulate the projection directly into it.
        o_ref[0] = jnp.zeros((tq, o_ref.shape[2]), o_ref.dtype) + bp_ref[...]

    @pl.when(ki == 0)
    def _():  # new head group: reset online-softmax state
        m_sc[...] = jnp.full(m_sc.shape, -jnp.inf, m_sc.dtype)
        l_sc[...] = jnp.zeros(l_sc.shape, l_sc.dtype)
        acc_sc[...] = jnp.zeros(acc_sc.shape, acc_sc.dtype)

    if need_mask:
        col = jax.lax.broadcasted_iota(jnp.int32, (tq, tk), 1) + ki * tk
        col_ok = col < n_valid

    for p in range(pack):          # static, unrolled loop over heads in group
        sl = pl.ds(p * head_dim, head_dim)
        qp = q_ref[0, :, sl]       # (tq, hd) bf16, scale*log2(e) pre-folded
        kp = k_ref[0, :, sl]       # (tk, hd) bf16
        vp = v_ref[0, :, sl]       # (tk, hd) bf16

        # q @ k^T via dot_general contracting the last dims (no explicit k.T).
        s = jax.lax.dot_general(qp, kp, (((1,), (1,)), ((), ())),
                                preferred_element_type=jnp.float32)  # (tq, tk)
        if need_mask:
            s = jnp.where(col_ok, s, -1e30)   # mask padded key columns

        m_prev = m_sc[p]
        m_new = jnp.maximum(m_prev, s.max(axis=-1, keepdims=True))
        alpha = jnp.exp2(m_prev - m_new)
        pmat = jnp.exp2(s - m_new)
        l_sc[p] = alpha * l_sc[p] + pmat.sum(axis=-1, keepdims=True)
        acc_sc[:, sl] = alpha * acc_sc[:, sl] + jnp.dot(
            pmat.astype(jnp.bfloat16), vp, preferred_element_type=jnp.float32)
        m_sc[p] = m_new

    @pl.when(ki == nk - 1)
    def _():  # head group finished: normalize and fold into the output block
        for p in range(pack):
            sl = pl.ds(p * head_dim, head_dim)
            if approx_recip:
                inv = pl.reciprocal(l_sc[p], approx=True)
            else:
                inv = 1.0 / l_sc[p]
            acc_sc[:, sl] = acc_sc[:, sl] * inv
        o_ref[0] = o_ref[0] + jnp.dot(
            acc_sc[...].astype(jnp.bfloat16), wp_ref[0],
            preferred_element_type=jnp.float32).astype(o_ref.dtype)


def multihead_attention_pallas(x, w_qkv, b_qkv, w_proj, b_proj, num_heads,
                               approx_recip=True):
    """x: (B, N, D) f32. Weights pre-transposed: w_qkv (D, 3D), w_proj (D, D).

    w_qkv columns are ordered [q | k | v], each head-major (H, hd) -- the same
    layout as PyTorch's nn.Linear(embed_dims, 3*embed_dims) weight (transposed).
    """
    B, N, D = x.shape
    H = num_heads
    assert D % H == 0, "embed_dims must be divisible by num_heads"
    hd = D // H
    scale = (1.0 / math.sqrt(hd)) * _LOG2E     # base-2 softmax scale

    pack = _head_pack(H, hd, D)
    G = H // pack
    gd = pack * hd

    n_pad, tq, tk = _attn_tiles(N)
    tqp = tq                                   # projection row tile

    # ---- one-time weight re-layout / casts in the wrapper (plain XLA) ----
    w_fused = jnp.concatenate([w_qkv[:, :D] * scale, w_qkv[:, D:]], axis=1)
    w_fused = w_fused.astype(jnp.bfloat16)                      # (D, 3D)
    b_fused = jnp.concatenate([b_qkv[:D] * scale, b_qkv[D:]])
    b_fused = b_fused.reshape(1, 3 * D).astype(jnp.float32)     # (1, 3D)
    w_pg = w_proj.reshape(G, gd, D).astype(jnp.bfloat16)        # per-group rows
    b_p = b_proj.reshape(1, D).astype(jnp.float32)

    x_bf = x.astype(jnp.bfloat16)
    if n_pad != N:
        x_bf = jnp.pad(x_bf, ((0, 0), (0, n_pad - N), (0, 0)))

    # ---- kernel 1: fused QKV projection ----
    qkv_shape = jax.ShapeDtypeStruct((B, n_pad, D), jnp.bfloat16)
    q, k, v = pl.pallas_call(
        functools.partial(_qkv_proj_kernel, d=D),
        out_shape=(qkv_shape, qkv_shape, qkv_shape),
        grid_spec=pltpu.PrefetchScalarGridSpec(
            num_scalar_prefetch=0,
            grid=(B, n_pad // tqp),
            in_specs=[
                pl.BlockSpec((1, tqp, D), lambda b, i: (b, i, 0)),   # x
                pl.BlockSpec((D, 3 * D), lambda b, i: (0, 0)),       # fused W (resident)
                pl.BlockSpec((1, 3 * D), lambda b, i: (0, 0)),       # fused bias
            ],
            out_specs=(
                pl.BlockSpec((1, tqp, D), lambda b, i: (b, i, 0)),
                pl.BlockSpec((1, tqp, D), lambda b, i: (b, i, 0)),
                pl.BlockSpec((1, tqp, D), lambda b, i: (b, i, 0)),
            ),
        ),
        compiler_params=pltpu.CompilerParams(
            dimension_semantics=("parallel", "parallel"),
            vmem_limit_bytes=_VMEM_LIMIT_BYTES),
    )(x_bf, w_fused, b_fused)

    # ---- kernel 2: flash attention + fused output projection ----
    out = pl.pallas_call(
        functools.partial(_flash_attn_proj_kernel, pack=pack, head_dim=hd,
                          n_valid=N, need_mask=(n_pad != N),
                          approx_recip=approx_recip),
        out_shape=jax.ShapeDtypeStruct((B, n_pad, D), jnp.float32),
        grid_spec=pltpu.PrefetchScalarGridSpec(
            num_scalar_prefetch=0,
            grid=(B, n_pad // tq, G, n_pad // tk),
            in_specs=[
                pl.BlockSpec((1, tq, gd), lambda b, qi, g, ki: (b, qi, g)),  # q group
                pl.BlockSpec((1, tk, gd), lambda b, qi, g, ki: (b, ki, g)),  # k group
                pl.BlockSpec((1, tk, gd), lambda b, qi, g, ki: (b, ki, g)),  # v group
                pl.BlockSpec((1, gd, D), lambda b, qi, g, ki: (g, 0, 0)),    # W_proj rows
                pl.BlockSpec((1, D), lambda b, qi, g, ki: (0, 0)),           # b_proj
            ],
            out_specs=pl.BlockSpec((1, tq, D), lambda b, qi, g, ki: (b, qi, 0)),
            scratch_shapes=[
                pltpu.VMEM((pack, tq, 1), jnp.float32),   # running max (per head)
                pltpu.VMEM((pack, tq, 1), jnp.float32),   # running denominator
                pltpu.VMEM((tq, gd), jnp.float32),        # group context accumulator
            ],
        ),
        compiler_params=pltpu.CompilerParams(
            dimension_semantics=("parallel", "parallel", "arbitrary", "arbitrary"),
            vmem_limit_bytes=_VMEM_LIMIT_BYTES),
    )(q, k, v, w_pg, b_p)

    if n_pad != N:
        out = out[:, :N, :]
    return out.astype(x.dtype)


def multihead_attention_ref(x, w_qkv, b_qkv, w_proj, b_proj, num_heads):
    """Pure-JAX f32 reference mirroring the PyTorch forward."""
    B, N, D = x.shape
    hd = D // num_heads
    qkv = x @ w_qkv + b_qkv
    qkv = qkv.reshape(B, N, 3, num_heads, hd).transpose(2, 0, 3, 1, 4)
    q, k, v = qkv[0], qkv[1], qkv[2]
    attn = (q @ jnp.swapaxes(k, -2, -1)) / math.sqrt(hd)
    attn = jax.nn.softmax(attn, axis=-1)
    out = (attn @ v).transpose(0, 2, 1, 3).reshape(B, N, D)
    return out @ w_proj + b_proj


if __name__ == "__main__":
    # Small, module-consistent shapes.
    B, N, D = 2, 8, 32
    num_heads = 4

    key = jax.random.PRNGKey(0)
    kx, kw1, kb1, kw2, kb2 = jax.random.split(key, 5)

    x = jax.random.normal(kx, (B, N, D), dtype=jnp.float32)

    # Deterministic PyTorch-Linear-style init, stored pre-transposed (y = x@W + b).
    bound = 1.0 / math.sqrt(D)
    w_qkv = jax.random.uniform(kw1, (D, 3 * D), jnp.float32, -bound, bound)
    b_qkv = jax.random.uniform(kb1, (3 * D,), jnp.float32, -bound, bound)
    w_proj = jax.random.uniform(kw2, (D, D), jnp.float32, -bound, bound)
    b_proj = jax.random.uniform(kb2, (D,), jnp.float32, -bound, bound)

    out = multihead_attention_pallas(x, w_qkv, b_qkv, w_proj, b_proj, num_heads)
    out = jax.block_until_ready(out)

    ref = multihead_attention_ref(x, w_qkv, b_qkv, w_proj, b_proj, num_heads)
    # bf16 MXU operands + approximate reciprocal -> loosened tolerance vs f32 ref.
    np.testing.assert_allclose(np.asarray(out), np.asarray(ref),
                               rtol=5e-2, atol=5e-2)

    print("KERNEL_OK")
</pallas_src>

<mosaic_0001>
module attributes {stable_mosaic.version = 11 : i64} {
  func.func @_qkv_proj_kernel(%arg0: i32, %arg1: i32, %arg2: memref<1x8x32xbf16, #tpu.memory_space<vmem>>, %arg3: memref<32x96xbf16, #tpu.memory_space<vmem>>, %arg4: memref<1x96xf32, #tpu.memory_space<vmem>>, %arg5: memref<1x8x32xbf16, #tpu.memory_space<vmem>>, %arg6: memref<1x8x32xbf16, #tpu.memory_space<vmem>>, %arg7: memref<1x8x32xbf16, #tpu.memory_space<vmem>>) attributes {dimension_semantics = [#tpu.dimension_semantics<parallel>, #tpu.dimension_semantics<parallel>], iteration_bounds = array<i64: 2, 1>, scalar_prefetch = 0 : i64, scratch_operands = 0 : i64, tpu.core_type = #tpu.core_type<tc>, window_params = [{transform_indices = @transform_0, window_bounds = array<i64: 1, 8, 32>}, {pipeline_mode = #tpu.pipeline_mode<synchronous>, transform_indices = @transform_1, window_bounds = array<i64: 32, 96>}, {pipeline_mode = #tpu.pipeline_mode<synchronous>, transform_indices = @transform_2, window_bounds = array<i64: 1, 96>}, {transform_indices = @transform_3, window_bounds = array<i64: 1, 8, 32>}, {transform_indices = @transform_4, window_bounds = array<i64: 1, 8, 32>}, {transform_indices = @transform_5, window_bounds = array<i64: 1, 8, 32>}]} {
    %c0 = arith.constant 0 : index
    %c0_0 = arith.constant 0 : index
    %c0_1 = arith.constant 0 : index
    %0 = vector.load %arg2[%c0, %c0_0, %c0_1] : memref<1x8x32xbf16, #tpu.memory_space<vmem>>, vector<1x8x32xbf16>
    %1 = vector.shape_cast %0 : vector<1x8x32xbf16> to vector<8x32xbf16>
    %c0_2 = arith.constant 0 : index
    %c0_3 = arith.constant 0 : index
    %2 = vector.load %arg3[%c0_2, %c0_3] : memref<32x96xbf16, #tpu.memory_space<vmem>>, vector<32x96xbf16>
    %cst = arith.constant dense<0.000000e+00> : vector<8x96xf32>
    %3 = tpu.matmul %1, %2, %cst {dimension_numbers = #tpu.dot_dimension_numbers<[1], [0], [0], [1], [0, 0, 1, 1], [], []>} : vector<8x32xbf16>, vector<32x96xbf16>, vector<8x96xf32> -> vector<8x96xf32>
    %c0_4 = arith.constant 0 : index
    %c0_5 = arith.constant 0 : index
    %4 = vector.load %arg4[%c0_4, %c0_5] : memref<1x96xf32, #tpu.memory_space<vmem>>, vector<1x96xf32>
    %5 = vector.broadcast %4 : vector<1x96xf32> to vector<8x96xf32>
    %6 = arith.addf %3, %5 : vector<8x96xf32>
    %7 = vector.extract_strided_slice %6 {offsets = [0, 0], sizes = [8, 32], strides = [1, 1]} : vector<8x96xf32> to vector<8x32xf32>
    %8 = arith.truncf %7 : vector<8x32xf32> to vector<8x32xbf16>
    %c0_6 = arith.constant 0 : index
    %c0_7 = arith.constant 0 : index
    %c0_8 = arith.constant 0 : index
    %9 = vector.load %arg5[%c0_6, %c0_7, %c0_8] : memref<1x8x32xbf16, #tpu.memory_space<vmem>>, vector<1x8x32xbf16>
    %10 = vector.shape_cast %9 : vector<1x8x32xbf16> to vector<8x32xbf16>
    %11 = vector.shape_cast %8 : vector<8x32xbf16> to vector<1x8x32xbf16>
    tpu.vector_store %arg5[%c0_6, %c0_7, %c0_8], %11 {strides = array<i32>} : memref<1x8x32xbf16, #tpu.memory_space<vmem>>, vector<1x8x32xbf16>,
    %12 = vector.extract_strided_slice %6 {offsets = [0, 32], sizes = [8, 32], strides = [1, 1]} : vector<8x96xf32> to vector<8x32xf32>
    %13 = arith.truncf %12 : vector<8x32xf32> to vector<8x32xbf16>
    %c0_9 = arith.constant 0 : index
    %c0_10 = arith.constant 0 : index
    %c0_11 = arith.constant 0 : index
    %14 = vector.load %arg6[%c0_9, %c0_10, %c0_11] : memref<1x8x32xbf16, #tpu.memory_space<vmem>>, vector<1x8x32xbf16>
    %15 = vector.shape_cast %14 : vector<1x8x32xbf16> to vector<8x32xbf16>
    %16 = vector.shape_cast %13 : vector<8x32xbf16> to vector<1x8x32xbf16>
    tpu.vector_store %arg6[%c0_9, %c0_10, %c0_11], %16 {strides = array<i32>} : memref<1x8x32xbf16, #tpu.memory_space<vmem>>, vector<1x8x32xbf16>,
    %17 = vector.extract_strided_slice %6 {offsets = [0, 64], sizes = [8, 32], strides = [1, 1]} : vector<8x96xf32> to vector<8x32xf32>
    %18 = arith.truncf %17 : vector<8x32xf32> to vector<8x32xbf16>
    %c0_12 = arith.constant 0 : index
    %c0_13 = arith.constant 0 : index
    %c0_14 = arith.constant 0 : index
    %19 = vector.load %arg7[%c0_12, %c0_13, %c0_14] : memref<1x8x32xbf16, #tpu.memory_space<vmem>>, vector<1x8x32xbf16>
    %20 = vector.shape_cast %19 : vector<1x8x32xbf16> to vector<8x32xbf16>
    %21 = vector.shape_cast %18 : vector<8x32xbf16> to vector<1x8x32xbf16>
    tpu.vector_store %arg7[%c0_12, %c0_13, %c0_14], %21 {strides = array<i32>} : memref<1x8x32xbf16, #tpu.memory_space<vmem>>, vector<1x8x32xbf16>,
    return
  }
  func.func @transform_0(%arg0: i32, %arg1: i32) -> (i32, i32, i32) {
    %c0_i32 = arith.constant 0 : i32
    %c0_i32_0 = arith.constant 0 : i32
    return %arg0, %arg1, %c0_i32 : i32, i32, i32
  }
  func.func @transform_1(%arg0: i32, %arg1: i32) -> (i32, i32) {
    %c0_i32 = arith.constant 0 : i32
    %c0_i32_0 = arith.constant 0 : i32
    %c0_i32_1 = arith.constant 0 : i32
    return %c0_i32, %c0_i32_0 : i32, i32
  }
  func.func @transform_2(%arg0: i32, %arg1: i32) -> (i32, i32) {
    %c0_i32 = arith.constant 0 : i32
    %c0_i32_0 = arith.constant 0 : i32
    %c0_i32_1 = arith.constant 0 : i32
    return %c0_i32, %c0_i32_0 : i32, i32
  }
  func.func @transform_3(%arg0: i32, %arg1: i32) -> (i32, i32, i32) {
    %c0_i32 = arith.constant 0 : i32
    %c0_i32_0 = arith.constant 0 : i32
    return %arg0, %arg1, %c0_i32 : i32, i32, i32
  }
  func.func @transform_4(%arg0: i32, %arg1: i32) -> (i32, i32, i32) {
    %c0_i32 = arith.constant 0 : i32
    %c0_i32_0 = arith.constant 0 : i32
    return %arg0, %arg1, %c0_i32 : i32, i32, i32
  }
  func.func @transform_5(%arg0: i32, %arg1: i32) -> (i32, i32, i32) {
    %c0_i32 = arith.constant 0 : i32
    %c0_i32_0 = arith.constant 0 : i32
    return %arg0, %arg1, %c0_i32 : i32, i32, i32
  }
}

</mosaic_0001>

<bundles_post_ra>
// kernel: tpu_custom_call.1
= control target key start
LH: loop header
LB: loop body
LE: loop exit
PB: predicated region body
PF: predicated region fallthrough
CT: control target
= control target key end

     0   :  { %11 = vsyncpa [#allocation3], 0  ;;  %s1258_s0 = inlined_call_operand.hbm [shape: bf16[2,8,32], index: 0, kind: input, shape index: {}]   ;;  %s1259_s1 = inlined_call_operand.hbm [shape: bf16[32,96], index: 1, kind: input, shape index: {}]   ;;  %s1260_s2 = inlined_call_operand.vmem [shape: f32[1,96], index: 2, kind: input, shape index: {}]   ;;  %s1261_s3 = inlined_call_operand.hbm [shape: bf16[2,8,32], index: 3, kind: output, shape index: {0}]   ;;  %s1262_s4 = inlined_call_operand.hbm [shape: bf16[2,8,32], index: 4, kind: output, shape index: {1}]   ;;  %s1263_s5 = inlined_call_operand.hbm [shape: bf16[2,8,32], index: 5, kind: output, shape index: {2}]  }
   0x1   :  { %13 = vsyncpa [#allocation3 + $0x1], 0 }
   0x2   :  { %14 = vsyncpa [#allocation6], 0 }
   0x3   :  { %15 = vsyncpa [#allocation4], 0 }
   0x4   :  { %17 = vsyncpa [#allocation4 + $0x1], 0 }
   0x5   :  { %18 = vsyncpa [#allocation9], 0 }
   0x6   :  { %20 = vsyncpa [#allocation9 + $0x1], 0  ;;  %s959_s18 = smov 0   ;;  %s961_s19 = smov 0  }
   0x7   :  { %s963_s20 = smov 0   ;;  %s965_s21 = smov 0  }
   0x8   :  { %s967_s22 = smov 0   ;;  %s969_s23 = smov 0  }
   0x9 LB: > { %s990_s24 = sadd.s32 4294967295, %s916_s23   ;;  %s1267_s25 = sadd.s32 4294967294, %s916_s23   ;;  %s916_s23 = sphi %s969_s23, %s26_s23   ;;  %s912_s22 = sphi %s967_s22, %s1287_s22   ;;  %s908_s21 = sphi %s965_s21, %s1286_s21   ;;  %s904_s20 = sphi %s963_s20, %s1285_s20   ;;  %s900_s19 = sphi %s961_s19, %s1284_s19   ;;  %s896_s18 = sphi %s959_s18, %s1283_s18  }
   0xa   : > { %p60_p0 = scmp.ne.s32.totalorder %s900_s19, %s896_s18  ;;  %p1264_p1 = scmp.eq.s32.totalorder %s990_s24, 0 }
   0xb   : > { %p134_p3 = scmp.eq.s32.totalorder %s1267_s25, 1  ;;  %p585_p5 = scmp.ge.s32.totalorder %s916_s23, 1 }
   0xc   : > { %p1001_p4 = por %p1264_p1, %p60_p0  ;;  %p197_p7 = scmp.lt.s32.totalorder %s916_s23, 3 }
   0xd   : > { %p1006_p6 = por %p134_p3, %p60_p0  ;;  %s918_s29 = smov [#allocation5]  }
   0xe   : > { %s1268_s26 = scalar_select %p1001_p4, 1, 0 }
   0xf   : > { %s1269_s27 = scalar_select %p1006_p6, 1, 0 }
  0x10   : > { %p1011_p8 = pnand %p585_p5, %p197_p7  ;;  %s209_s30 = sshll.u32 %s918_s29, 4  ;;  %s210_s30 = int_to_ptr.vmem [resolvable:$true] %s209_s30 }
  0x11   : > { %s38_s7 = sadd.s32 1, %s912_s22  ;;  %s712_s10 = scalar_lea.hbm %s1259_s1, 256 }
  0x12   : > { %s1270_s28 = scalar_select %p1011_p8, 1, 0 }
  0x13   : > { %p633_p9 = pneg %p1011_p8  ;;  %p713_p12 = scmp.ne.s32.totalorder %s1259_s1, %s712_s10 }
  0x14   : > { %p719_p5 = scmp.lt.u32.totalorder %s712_s10, %s1259_s1 }
  0x15   : > { %p1020_p11 = pnand %p633_p9, %p1264_p1 }
  0x17   : > { %p714_p13 = pneg %p1020_p11 }
  0x19   : > { %p715_p0 = pnand %p714_p13, %p713_p12 }
  0x1b   : > { %p716_p3 = pneg %p715_p0 }
  0x1d   : > { %p721_p7 = pnand %p719_p5, %p716_p3 }
  0x1f   : > { %724 = shalt.err (!%p721_p7)
}
  0x20   : > { %s725_s15 = scalar_lea.vmem %s210_s30, 256  ;;  %p733_p2 = scmp.lt.s32.totalorder %s210_s30, %s210_s30 }
  0x21   : > { %p726_p9 = scmp.ne.s32.totalorder %s210_s30, %s725_s15  ;;  %p734_p6 = scmp.lt.s32.totalorder %s725_s15, %s725_s15 }
  0x23   : > { %p728_p10 = pnand %p726_p9, %p714_p13  ;;  %p735_p4 = por %p734_p6, %p733_p2 }
  0x25   : > { %p729_p1 = pneg %p728_p10 }
  0x27   : > { %p736_p8 = pnand %p735_p4, %p729_p1 }
  0x29   : > { %739 = shalt.err (!%p736_p8)
}
  0x2a   : > { %s919_s16 = smov 64   ;;  %s920_s17 = smov 4  }
  0x2b   : > { %636 = dma.hbm_to_vmem [thread:$0]  (!%p1020_p11), %s1259_s1, 256, %s210_s30, [#allocation6], %s919_s16, %s919_s16, %s920_s17  }
  0x2c   : > { %p40_p1 = scmp.ge.s32.totalorder %s38_s7, 2  ;;  %s47_s9 = sadd.s32 1, %s904_s20 }
  0x2d   : > { %p54_p2 = scmp.ne.s32.totalorder %s904_s20, %s900_s19  ;;  %p55_p4 = scmp.eq.s32.totalorder %s916_s23, 0 }
  0x2e   : > { %s1289_s7 = smov (%p40_p1, %s38_s7), 0  ;;  %p1273_p8 = scmp.eq.s32.totalorder %s990_s24, 1 }
  0x2f   : > { %p1047_p6 = por %p55_p4, %p54_p2  ;;  %s42_s6 = ssub.s32 %s912_s22, %s1289_s7 }
  0x30   : > { %p1053_p10 = por %p1273_p8, %p54_p2  ;;  %p652_p12 = scmp.lt.s32.totalorder %s916_s23, 2 }
  0x31   : > { %p45_p11 = scmp.eq.s32.totalorder %s42_s6, 0  ;;  %s226_s30 = sand.u32 1, %s904_s20  }
  0x32   : > { %s588_s12 = sshll.u32 %s226_s30, 2  ;;  %s589_s14 = sshll.u32 %s912_s22, 6 }
  0x33   : > { %s1062_s13 = scalar_select %p45_p11, %s904_s20, %s47_s9  }
  0x34   : > { %s1068_s17 = scalar_lea.hbm %s1258_s0, %s589_s14  ;;  %s230_s29 = scalar_lea.vmem [#allocation2], %s588_s12 }
  0x35   : > { %s238_s8 = sshll.u32 %s230_s29, 4  ;;  %p1074_p13 = pnand %p652_p12, %p1047_p6  ;;  %s1070_s8 = int_to_ptr.vmem [resolvable:$true] %s238_s8 }
  0x36   : > { %s227_s9 = scalar_lea.sflag [#allocation3], %s226_s30  ;;  %s740_s25 = scalar_lea.hbm %s1068_s17, 64 }
  0x37   : > { %p741_p0 = scmp.ne.s32.totalorder %s1068_s17, %s740_s25  ;;  %p742_p3 = pneg %p1074_p13 }
  0x38   : > { %s745_s15 = scalar_lea.hbm %s1258_s0, 128  ;;  %p746_p9 = scmp.lt.u32.totalorder %s1068_s17, %s1258_s0 }
  0x39   : > { %p743_p5 = pnand %p742_p3, %p741_p0  ;;  %p747_p1 = scmp.lt.u32.totalorder %s745_s15, %s740_s25 }
  0x3a   : > { %p749_p4 = scmp.lt.u32.totalorder %s740_s25, %s1068_s17 }
  0x3b   : > { %p744_p7 = pneg %p743_p5  ;;  %p748_p2 = por %p747_p1, %p746_p9 }
  0x3d   : > { %p750_p6 = por %p749_p4, %p748_p2 }
  0x3f   : > { %p751_p8 = pnand %p750_p6, %p744_p7 }
  0x41   : > { %754 = shalt.err (!%p751_p8)
}
  0x42   : > { %s755_s30 = scalar_lea.vmem %s1070_s8, 64  ;;  %s921_s29 = smov [#allocation2]  }
  0x43   : > { %p756_p12 = scmp.ne.s32.totalorder %s1070_s8, %s755_s30  ;;  %s760_s12 = sshll.u32 %s921_s29, 4  ;;  %s761_s12 = int_to_ptr.vmem [resolvable:$false] %s760_s12 }
  0x44   : > { %s762_s14 = scalar_lea.vmem %s761_s12, 128  ;;  %p763_p5 = scmp.lt.s32.totalorder %s1070_s8, %s761_s12 }
  0x45   : > { %p758_p11 = pnand %p756_p12, %p742_p3  ;;  %p764_p9 = scmp.lt.s32.totalorder %s762_s14, %s755_s30 }
  0x47   : > { %p759_p0 = pneg %p758_p11  ;;  %p765_p1 = por %p764_p9, %p763_p5 }
  0x49   : > { %p766_p2 = pnand %p765_p1, %p759_p0 }
  0x4b   : > { %769 = shalt.err (!%p766_p2)
}
  0x4c   : > { %640 = dma.hbm_to_vmem [thread:$0]  (!%p1074_p13), %s1068_s17, 64, %s1070_s8, %s227_s9  }
  0x4d   : > { %p1276_p7 = scmp.ne.s32.totalorder %s1270_s28, 0 }
  0x4e   : > { %s1106_s25 = sand.u32 (!%p1276_p7), 1, %s900_s19   ;;  %p1277_p3 = scmp.ne.s32.totalorder (!%p1276_p7), %s1268_s26, 0 }
  0x4f   : > { %247 = sbr.rel (%p1276_p7) target bundleno = 467 (0x1d3), region = 32  ;;  %s1109_s15 = sshll.u32 (!%p1276_p7), %s1106_s25, 2 }
  0x50   : > { %s250_s10 = scalar_lea.sflag (!%p1276_p7), [#allocation3], %s1106_s25  ;;  %s253_s16 = scalar_lea.vmem (!%p1276_p7), [#allocation2], %s1109_s15 }
  0x56   : > { %879 = dma.done.wait (%p1277_p3), %s250_s10, 64  }
  0x57   : > { %881 = vsyncadd (%p1277_p3), %s250_s10, 4294967232  ;;  %p1278_p13 = scmp.eq.s32.totalorder %s990_s24, 0 }
  0x59   : > { %883 = dma.done.wait (%p1278_p13), [#allocation6], 256   ;;  %p1279_p4 = pmov %p1278_p13 }
  0x5a   : > { %v922_v0 = vmov 0.0   ;;  %vm923_vm0 = vmmov 0   ;;  %v710_v1 = vld [vmem:[#allocation5] sm:$0xff]   ;;  %v711_v2 = vld [vmem:[#allocation5 + $0x8] sm:$0xff]   ;;  %v295_v3 = vld [vmem:[%s253_s16] sm:$0xf] }
  0x5b   : > { %885 = vsyncadd (%p1279_p4), [#allocation6], 4294967040  ;;  %613 = vmatprep.subr.bf16.mxu0 %v922_v0  ;;  %617 = vmatprep.mubr.msk.bf16.mxu0 %vm923_vm0, %v922_v0  ;;  %vm319_vm1 = vcmask 261120   ;;  %v596_v4 = vld [vmem:[%s1260_s2] ss:$0 sm:$0xff]  ;;  %s1125_s17 = sshll.u32 %s908_s21, 6 }
  0x5c   : > { %614 = vmatpush3.bf16.msra.mxu0 %v710_v1  ;;  %s279_s8 = scalar_lea.vmem [#allocation7], %s1109_s15  ;;  %vm364_vm2 = vcmask 257024   ;;  %s1132_s29 = scalar_lea.hbm %s1261_s3, %s1125_s17 }
  0x5d   : > { %615 = vmatprep.subr.bf16.mxu0 %v922_v0  ;;  %s402_s6 = sshll.u32 %s279_s8, 4  ;;  %s924_s21 = smov 96   ;;  %s1134_s6 = int_to_ptr.vmem [resolvable:$true] %s402_s6 }
  0x5e   : > { %s378_s12 = scalar_lea.sflag [#allocation4], %s1106_s25  ;;  %s770_s14 = scalar_lea.vmem %s1134_s6, 64 }
  0x5f   : > { %p771_p6 = scmp.ne.s32.totalorder %s1134_s6, %s770_s14  ;;  %s925_s10 = smov [#allocation7]  }
  0x60   : > { %616 = vmatpush3.bf16.msra.mxu0 %v711_v2  ;;  %s774_s16 = sshll.u32 %s925_s10, 4  ;;  %s775_s16 = int_to_ptr.vmem [resolvable:$false] %s774_s16 }
  0x61   : > { %p772_p8 = pnand %p771_p6, %p1053_p10  ;;  %s776_s26 = scalar_lea.vmem %s775_s16, 128 }
  0x62   : > { %p777_p11 = scmp.lt.s32.totalorder %s1134_s6, %s775_s16  ;;  %p778_p0 = scmp.lt.s32.totalorder %s776_s26, %s770_s14 }
  0x63   : > { %618 = vmatmul.mubr.msk.bf16.vlgmr.msra.gmra.mrb[0].mxu0 %vm319_vm1, %v295_v3  ;;  %p773_p12 = pneg %p772_p8 }
  0x64   : > { %p779_p5 = por %p778_p0, %p777_p11 }
  0x66   : > { %p780_p9 = pnand %p779_p5, %p773_p12 }
 0x136   : > { %v357_v5 = vpop.f32.mrb[0].mxu0 }
 0x137   : > { %v358_v6 = vadd.f32 %v596_v4, %v357_v5  ;;  %v619_v7 = vpop.f32.mrb[1].mxu0 }
 0x138   : > { %v360_v8 = vpop.f32.mrb[2].mxu0 }
 0x139   : > { %v363_v9 = vpack.c.bf16 %v358_v6, %v358_v6  ;;  %v620_v10 = vpop.f32.mrb[3].mxu0 }
 0x13b   : > { %369 = vrot.lane.b32.xlu0 %v363_v9, %s924_s21  ;;  %365 = vst.msk [vmem:[%s279_s8] sm:$0xf] %vm364_vm2, %v363_v9 }
 0x13c   : > { %783 = shalt.err (!%p780_p9)
}
 0x13d   : > { %s784_s25 = scalar_lea.hbm %s1132_s29, 64  ;;  %s788_s9 = scalar_lea.hbm %s1261_s3, 128 }
 0x13e   : > { %p785_p1 = scmp.ne.s32.totalorder %s1132_s29, %s784_s25  ;;  %p789_p3 = scmp.lt.u32.totalorder %s1132_s29, %s1261_s3 }
 0x13f   : > { %p790_p13 = scmp.lt.u32.totalorder %s788_s9, %s784_s25  ;;  %p792_p6 = scmp.lt.u32.totalorder %s784_s25, %s1132_s29 }
 0x140   : > { %p786_p2 = pnand %p785_p1, %p1053_p10 }
 0x141   : > { %p791_p4 = por %p790_p13, %p789_p3 }
 0x142   : > { %p787_p7 = pneg %p786_p2 }
 0x143   : > { %p793_p8 = por %p792_p6, %p791_p4 }
 0x145   : > { %p794_p12 = pnand %p793_p8, %p787_p7 }
 0x147   : > { %797 = shalt.err (!%p794_p12)
}
 0x148   : > { %627 = dma.vmem_to_hbm [thread:$0]  (%p1053_p10), %s1134_s6, 64, %s1132_s29, %s378_s12  }
 0x149   : > { %s926_s14 = smov 64   ;;  %s382_s10 = sand.u32 1, %s990_s24  }
 0x14a   : > { %373 = vrot.lane.b32.xlu0 %v363_v9, %s926_s14  ;;  %s286_s16 = scalar_lea.vmem [#allocation8], %s1109_s15  ;;  %s1165_s8 = scalar_lea.hbm %s1262_s4, %s1125_s17 }
 0x14b   : > { %s416_s26 = sshll.u32 %s286_s16, 4  ;;  %s293_s9 = scalar_lea.vmem [#allocation10], %s1109_s15  ;;  %s1167_s26 = int_to_ptr.vmem [resolvable:$true] %s416_s26 }
 0x14c   : > { %s1172_s30 = sshll.u32 %s293_s9, 4  ;;  %s1175_s24 = scalar_lea.sflag [#allocation9], %s382_s10  ;;  %s1206_s30 = int_to_ptr.vmem [resolvable:$true] %s1172_s30 }
 0x14d   : > { %s798_s6 = scalar_lea.vmem %s1167_s26, 64  ;;  %s927_s29 = smov [#allocation8]  }
 0x14e   : > { %p799_p11 = scmp.ne.s32.totalorder %s1167_s26, %s798_s6  ;;  %s802_s12 = sshll.u32 %s927_s29, 4  ;;  %s803_s12 = int_to_ptr.vmem [resolvable:$false] %s802_s12 }
 0x14f   : > { %s804_s21 = scalar_lea.vmem %s803_s12, 128  ;;  %p805_p9 = scmp.lt.s32.totalorder %s1167_s26, %s803_s12 }
 0x150   : > { %p800_p0 = pnand %p799_p11, %p1053_p10  ;;  %p806_p1 = scmp.lt.s32.totalorder %s804_s21, %s798_s6 }
 0x152   : > { %p801_p5 = pneg %p800_p0  ;;  %p807_p2 = por %p806_p1, %p805_p9 }
 0x154   : > { %p808_p7 = pnand %p807_p2, %p801_p5 }
 0x1ad   : > { %v370_v11 = vpop.permute.xlu0 %369 }
 0x1ae   : > { %372 = vst.msk [vmem:[%s286_s16] sm:$0xf] %vm364_vm2, %v370_v11 }
 0x1af   : > { %811 = shalt.err (!%p808_p7)
}
 0x1b0   : > { %s812_s14 = scalar_lea.hbm %s1165_s8, 64  ;;  %s816_s25 = scalar_lea.hbm %s1262_s4, 128 }
 0x1b1   : > { %p813_p3 = scmp.ne.s32.totalorder %s1165_s8, %s812_s14  ;;  %p817_p6 = scmp.lt.u32.totalorder %s1165_s8, %s1262_s4 }
 0x1b2   : > { %p818_p8 = scmp.lt.u32.totalorder %s816_s25, %s812_s14  ;;  %p820_p11 = scmp.lt.u32.totalorder %s812_s14, %s1165_s8 }
 0x1b3   : > { %p814_p13 = pnand %p813_p3, %p1053_p10 }
 0x1b4   : > { %p819_p12 = por %p818_p8, %p817_p6 }
 0x1b5   : > { %p815_p4 = pneg %p814_p13 }
 0x1b6   : > { %p821_p0 = por %p820_p11, %p819_p12 }
 0x1b8   : > { %p822_p5 = pnand %p821_p0, %p815_p4 }
 0x1ba   : > { %825 = shalt.err (!%p822_p5)
}
 0x1bb   : > { %628 = dma.vmem_to_hbm [thread:$0]  (%p1053_p10), %s1167_s26, 64, %s1165_s8, %s1175_s24  }
 0x1bc   : > { %s1203_s21 = scalar_lea.hbm %s1263_s5, %s1125_s17  ;;  %v374_v12 = vpop.permute.xlu0 %373  ;;  %s826_s14 = scalar_lea.vmem %s1206_s30, 64 }
 0x1bd   : > { %376 = vst.msk [vmem:[%s293_s9] sm:$0xf] %vm364_vm2, %v374_v12  ;;  %p827_p9 = scmp.ne.s32.totalorder %s1206_s30, %s826_s14  ;;  %s928_s26 = smov [#allocation10]  }
 0x1be   : > { %s830_s8 = sshll.u32 %s928_s26, 4  ;;  %s831_s8 = int_to_ptr.vmem [resolvable:$false] %s830_s8 }
 0x1bf   : > { %p828_p1 = pnand %p827_p9, %p1053_p10  ;;  %s832_s10 = scalar_lea.vmem %s831_s8, 128 }
 0x1c0   : > { %p833_p7 = scmp.lt.s32.totalorder %s1206_s30, %s831_s8  ;;  %p834_p3 = scmp.lt.s32.totalorder %s832_s10, %s826_s14 }
 0x1c1   : > { %p829_p2 = pneg %p828_p1 }
 0x1c2   : > { %p835_p13 = por %p834_p3, %p833_p7 }
 0x1c4   : > { %p836_p4 = pnand %p835_p13, %p829_p2 }
 0x1c6   : > { %839 = shalt.err (!%p836_p4)
}
 0x1c7   : > { %s840_s15 = scalar_lea.hbm %s1203_s21, 64  ;;  %s844_s16 = scalar_lea.hbm %s1263_s5, 128 }
 0x1c8   : > { %p841_p6 = scmp.ne.s32.totalorder %s1203_s21, %s840_s15  ;;  %p845_p11 = scmp.lt.u32.totalorder %s1203_s21, %s1263_s5 }
 0x1c9   : > { %p846_p0 = scmp.lt.u32.totalorder %s844_s16, %s840_s15  ;;  %p848_p9 = scmp.lt.u32.totalorder %s840_s15, %s1203_s21 }
 0x1ca   : > { %p842_p8 = pnand %p841_p6, %p1053_p10 }
 0x1cb   : > { %p847_p5 = por %p846_p0, %p845_p11 }
 0x1cc   : > { %p843_p12 = pneg %p842_p8 }
 0x1cd   : > { %p849_p1 = por %p848_p9, %p847_p5 }
 0x1cf   : > { %p850_p2 = pnand %p849_p1, %p843_p12 }
 0x1d1   : > { %853 = shalt.err (!%p850_p2)
}
 0x1d2   : > { %629 = dma.vmem_to_hbm [thread:$0]  (%p1053_p10), %s1206_s30, 64, %s1203_s21, %s1175_s24  }
 0x1d3 PF: > { %s442_s29 = sand.u32 1, %s896_s18   ;;  %p1280_p7 = scmp.ne.s32.totalorder %s1269_s27, 0 }
 0x1d4   : > { %p1281_p3 = scmp.ge.s32.totalorder %s916_s23, 2  ;;  %s443_s6 = scalar_lea.sflag [#allocation4], %s442_s29 }
 0x1d6   : > { %p642_p13 = pnand %p1281_p3, %p1280_p7 }
 0x1d8   : > { %887 = dma.done.wait (!%p642_p13), %s443_s6, 64  }
 0x1d9   : > { %889 = vsyncadd (!%p642_p13), %s443_s6, 4294967232  ;;  %s1282_s12 = sadd.s32 4294967294, %s916_s23  }
 0x1da   : > { %s451_s14 = sand.u32 1, %s1282_s12  }
 0x1db   : > { %s452_s26 = scalar_lea.sflag [#allocation9], %s451_s14 }
 0x1dc   : > { %891 = dma.done.wait (!%p642_p13), %s452_s26, 128  }
 0x1dd   : > { %893 = vsyncadd (!%p642_p13), %s452_s26, 4294967168  ;;  %s26_s23 = sadd.s32 1, %s916_s23   ;;  %s1283_s18 = smov %s900_s19 }
 0x1de   : > { %p23_p10 = scmp.ge.s32.totalorder %s26_s23, 4   ;;  %s1284_s19 = smov %s904_s20 }
 0x1df   : > { %s1285_s20 = smov %s1062_s13  ;;  %s1286_s21 = smov %s912_s22 }
 0x1e0   : > { %s1287_s22 = smov %s1289_s7  ;;  %25 = sbr.rel (!%p23_p10) target bundleno = 9 (0x9), region = 113 }
 0x1e7   :  { %466 = vsyncpa [#allocation3], 1 }
 0x1e8   :  { %468 = vsyncpa [#allocation3 + $0x1], 1 }
 0x1e9   :  { %469 = vsyncpa [#allocation6], 1 }
 0x1ea   :  { %470 = vsyncpa [#allocation4], 1 }
 0x1eb   :  { %472 = vsyncpa [#allocation4 + $0x1], 1 }
 0x1ec   :  { %473 = vsyncpa [#allocation9], 1 }
 0x1ed   :  { %475 = vsyncpa [#allocation9 + $0x1], 1 }

</bundles_post_ra>
